<compile_context>
chip_gen: v5e
topology: v5e:2x2
jax: 0.10.0
libtpu: 0.0.40
codegen_flags: <defaults>
</compile_context>

<pallas_src>
import functools
import math

import numpy as np
import jax
import jax.numpy as jnp
from jax.experimental import pallas as pl
from jax.experimental.pallas import tpu as pltpu


# ---------------------------------------------------------------------------
# Host-side (one-time) parameter folding / fusion / slab packing.
# ---------------------------------------------------------------------------
def _round_up(x, m):
    return (x + m - 1) // m * m


def pack_params(params):
    """Fold/fuse the module parameters into two VMEM slabs.

    Returns (w_slab, b_slab, w_layout, b_layout, dims) where layouts map a
    logical name to static (row_offset, rows, cols) / (row, cols).
    """
    p = {k: np.asarray(v, np.float32) for k, v in params.items()}
    num_hidden = p["kk_w"].shape[0]
    nh_v = p["kk_w"].shape[1]
    nh_kq = p["q_w3"].shape[1]
    emb_hidden = p["k_w2"].shape[0]                       # 32
    slab_cols = max(2 * nh_v, nh_kq, 2 * emb_hidden, num_hidden)

    # Fold LayerNorm affine into the following Linear and lane-concat k|v.
    kk_w = p["kk_w"] * p["kk_ln_g"].reshape(-1, 1)
    kk_b = p["kk_ln_b"] @ p["kk_w"] + p["kk_b"]
    vv_w = p["vv_w"] * p["vv_ln_g"].reshape(-1, 1)
    vv_b = p["vv_ln_b"] @ p["vv_w"] + p["vv_b"]
    w_kv = np.concatenate([kk_w, vv_w], axis=1)           # (nh, 2*nh_v)
    b_kv = np.concatenate([kk_b, vv_b], axis=1)

    # Fuse key-embedding and value-embedding MLPs (same input) into one MLP
    # with lane-concatenated layer-1 and block-diagonal layer-2/3 weights.
    def blkdiag(a, b):
        out = np.zeros((a.shape[0] + b.shape[0], a.shape[1] + b.shape[1]),
                       np.float32)
        out[:a.shape[0], :a.shape[1]] = a
        out[a.shape[0]:, a.shape[1]:] = b
        return out

    w_e1 = np.concatenate([p["k_w1"], p["v_w1"]], axis=1)  # (2, 64)
    b_e1 = np.concatenate([p["k_b1"], p["v_b1"]], axis=1)
    w_e2 = blkdiag(p["k_w2"], p["v_w2"])                   # (64, 64)
    b_e2 = np.concatenate([p["k_b2"], p["v_b2"]], axis=1)
    w_e3 = blkdiag(p["k_w3"], p["v_w3"])                   # (64, 2*nh_v)
    b_e3 = np.concatenate([p["k_b3"], p["v_b3"]], axis=1)

    w_entries = [
        ("kv", w_kv), ("e1", w_e1), ("e2", w_e2), ("e3", w_e3),
        ("q1", p["q_w1"]), ("q2", p["q_w2"]), ("q3", p["q_w3"]),
        ("km1", p["km_w1"]), ("km2", p["km_w2"]), ("o", p["o_w"]),
    ]
    b_entries = [
        ("kv", b_kv), ("e1", b_e1), ("e2", b_e2), ("e3", b_e3),
        ("q1", p["q_b1"]), ("q2", p["q_b2"]), ("q3", p["q_b3"]),
        ("km1", p["km_b1"]), ("km2", p["km_b2"]), ("o", p["o_b"]),
    ]

    w_layout, off = {}, 0
    for name, w in w_entries:
        w_layout[name] = (off, w.shape[0], w.shape[1])
        off = _round_up(off + w.shape[0], 8)               # 8-row (sublane) aligned
    w_slab = np.zeros((_round_up(off, 8), slab_cols), np.float32)
    for name, w in w_entries:
        r0, r, c = w_layout[name]
        w_slab[r0:r0 + r, :c] = w

    b_layout = {}
    b_slab = np.zeros((_round_up(len(b_entries), 8), slab_cols), np.float32)
    for i, (name, b) in enumerate(b_entries):
        b_layout[name] = (i, b.shape[1])
        b_slab[i, :b.shape[1]] = b.reshape(-1)

    dims = dict(num_hidden=num_hidden, nh_v=nh_v, nh_kq=nh_kq)
    return jnp.asarray(w_slab), jnp.asarray(b_slab), w_layout, b_layout, dims


# ---------------------------------------------------------------------------
# Fused kernel (single pallas_call, no grid, everything VMEM-resident).
# ---------------------------------------------------------------------------
def _sparse_mask_attention_kernel(kv_ref, ke_ref, qe_ref, w_ref, b_ref, out_ref,
                                  *, wl, bl, num_heads, dq, dv, nh_v):
    f32 = jnp.float32

    def W(name):
        r0, r, c = wl[name]
        return w_ref[pl.ds(r0, r), pl.ds(0, c)]

    def B(name):
        i, c = bl[name]
        return b_ref[pl.ds(i, 1), pl.ds(0, c)]

    def silu(x):
        return x * jax.nn.sigmoid(x)

    def lin(x, name):
        return jnp.dot(x, W(name), preferred_element_type=f32) + B(name)

    def lin2wide(x, name):
        # Contraction dim is 2: two VPU FMAs beat a (mostly idle) MXU pass.
        w = W(name)
        return x[:, 0:1] * w[0:1, :] + x[:, 1:2] * w[1:2, :] + B(name)

    kv = kv_ref[...].astype(f32)
    ke = ke_ref[...].astype(f32)
    qe = qe_ref[...].astype(f32)

    # kv branch: one shared LayerNorm (stats only; affine folded into weights),
    # one (Nkv, nh) x (nh, 2*nh_v) matmul producing [k(kv) | v(kv)].
    mu = jnp.mean(kv, axis=-1, keepdims=True)
    xc = kv - mu
    var = jnp.mean(xc * xc, axis=-1, keepdims=True)
    xn = xc * jax.lax.rsqrt(var + 1e-5)
    kvb = lin(xn, "kv")
    k_kv, v_kv = kvb[:, :nh_v], kvb[:, nh_v:]

    # Fused key/value embedding MLPs (block-diagonal weights): 3 matmuls.
    h = silu(lin2wide(ke, "e1"))
    h = silu(lin(h, "e2"))
    e = lin(h, "e3")
    k_emb, v_emb = e[:, :nh_v], e[:, nh_v:]

    # Query MLP.
    hq = silu(lin2wide(qe, "q1"))
    hq = silu(lin(hq, "q2"))
    q2d = lin(hq, "q3")                                   # (Nq, nh_kq)

    # k = k_mlp(cat(self.k(kv), self.key(key_embedding))): single K=256 matmul.
    kcat = jnp.concatenate([k_kv, k_emb], axis=-1)
    k2d = lin(silu(lin(kcat, "km1")), "km2")              # (Nkv, nh_kq)

    # v = self.v(kv) + self.value(key_embedding).
    v2d = v_kv + v_emb                                    # (Nkv, nh_v)

    # Multi-head attention; head h lives in columns [h*D, (h+1)*D).
    qs = q2d * (1.0 / math.sqrt(dq))                      # fold scale once
    ohs = []
    for hh in range(num_heads):
        qh = qs[:, hh * dq:(hh + 1) * dq]
        kh = k2d[:, hh * dq:(hh + 1) * dq]
        vh = v2d[:, hh * dv:(hh + 1) * dv]
        s = jax.lax.dot_general(qh, kh, (((1,), (1,)), ((), ())),
                                preferred_element_type=f32)
        s = s - jnp.max(s, axis=-1, keepdims=True)
        p = jnp.exp(s)
        l = jnp.sum(p, axis=-1, keepdims=True)
        # Deferred normalization: scale the (Nq, Dv) result with an EUP
        # reciprocal instead of dividing the (Nq, Nkv) probability block.
        ohs.append(jnp.dot(p, vh, preferred_element_type=f32)
                   * pl.reciprocal(l, approx=True))

    # MergeHeads + output Linear as ONE lane-packed (Nq,128)x(128,nh) matmul.
    o2d = jnp.concatenate(ohs, axis=-1)
    out_ref[...] = (jnp.dot(o2d, W("o"), preferred_element_type=f32)
                    + B("o")).astype(out_ref.dtype)


def sparse_mask_attention_forward(kv, key_embedding, query_embedding,
                                  w_slab, b_slab, *, w_layout, b_layout,
                                  num_heads, num_hidden, nh_v, nh_kq):
    """kv: (Nkv, nh), key_embedding: (Nkv, 2), query_embedding: (Nq, 2)."""
    n_q = query_embedding.shape[0]
    n_kv = kv.shape[0]
    dq = nh_kq // num_heads
    dv = nh_v // num_heads

    vmem = pl.BlockSpec(memory_space=pltpu.MemorySpace.VMEM)
    kernel = functools.partial(
        _sparse_mask_attention_kernel, wl=w_layout, bl=b_layout,
        num_heads=num_heads, dq=dq, dv=dv, nh_v=nh_v)

    # Advisory cost hint for XLA scheduling around the custom call.
    eh2 = 2 * 32  # fused embedding-MLP hidden width
    macs = (n_kv * num_hidden * 2 * nh_v
            + n_kv * (2 * eh2 + eh2 * eh2 + eh2 * 2 * nh_v)
            + n_q * (2 * 32 + 32 * 32 + 32 * nh_kq)
            + n_kv * (2 * nh_v * nh_v + nh_v * nh_kq)
            + num_heads * n_q * n_kv * (dq + dv)
            + n_q * nh_v * num_hidden)
    trans = (2 * n_kv * eh2 + 2 * n_q * 32 + n_kv * nh_v
             + num_heads * n_q * n_kv + num_heads * n_q + n_kv)
    bytes_accessed = 4 * (int(w_slab.size) + int(b_slab.size) + int(kv.size)
                          + int(key_embedding.size) + int(query_embedding.size)
                          + n_q * num_hidden)

    return pl.pallas_call(
        kernel,
        out_shape=jax.ShapeDtypeStruct((n_q, num_hidden), jnp.float32),
        in_specs=[vmem] * 5,
        out_specs=vmem,
        cost_estimate=pl.CostEstimate(flops=2 * int(macs),
                                      transcendentals=int(trans),
                                      bytes_accessed=int(bytes_accessed)),
    )(kv, key_embedding, query_embedding, w_slab, b_slab)


# ---------------------------------------------------------------------------
# Pure-JAX reference (mirrors the PyTorch module exactly, natural params).
# ---------------------------------------------------------------------------
def _linear(x, w, b):
    return x @ w + b


def _mlp3_ref(x, w1, b1, w2, b2, w3, b3):
    h = jax.nn.silu(_linear(x, w1, b1))
    h = jax.nn.silu(_linear(h, w2, b2))
    return _linear(h, w3, b3)


def _layer_norm_ref(x, g, b, eps=1e-5):
    mu = jnp.mean(x, axis=-1, keepdims=True)
    var = jnp.mean((x - mu) ** 2, axis=-1, keepdims=True)
    return (x - mu) / jnp.sqrt(var + eps) * g + b


def _split_heads(x, h):
    b, hd = x.shape
    d = hd // h
    x = x.reshape(b, h, d)[None]              # (1, B, H, D)
    return jnp.transpose(x, (0, 2, 1, 3))     # (1, H, B, D)


def _merge_heads(x):
    x = x[0]                                  # (H, B, D)
    x = jnp.transpose(x, (1, 0, 2))           # (B, H, D)
    return x.reshape(x.shape[0], -1)          # (B, H*D)


def reference_forward(kv, key_embedding, query_embedding, p, *, num_heads):
    q = _split_heads(
        _mlp3_ref(query_embedding, p["q_w1"], p["q_b1"], p["q_w2"], p["q_b2"],
                  p["q_w3"], p["q_b3"]), num_heads)
    k_kv = _linear(_layer_norm_ref(kv, p["kk_ln_g"], p["kk_ln_b"]),
                   p["kk_w"], p["kk_b"])
    k_emb = _mlp3_ref(key_embedding, p["k_w1"], p["k_b1"], p["k_w2"], p["k_b2"],
                      p["k_w3"], p["k_b3"])
    h = jax.nn.silu(_linear(jnp.concatenate([k_kv, k_emb], axis=1),
                            p["km_w1"], p["km_b1"]))
    k = _split_heads(_linear(h, p["km_w2"], p["km_b2"]), num_heads)
    v_flat = (_linear(_layer_norm_ref(kv, p["vv_ln_g"], p["vv_ln_b"]),
                      p["vv_w"], p["vv_b"])
              + _mlp3_ref(key_embedding, p["v_w1"], p["v_b1"], p["v_w2"],
                          p["v_b2"], p["v_w3"], p["v_b3"]))
    v = _split_heads(v_flat, num_heads)
    d_k = q.shape[-1]
    scores = jnp.einsum("lhqd,lhkd->lhqk", q, k) / math.sqrt(d_k)
    attn = jax.nn.softmax(scores, axis=-1)
    o = jnp.einsum("lhqk,lhkd->lhqd", attn, v)
    return _linear(_merge_heads(o), p["o_w"], p["o_b"])


if __name__ == "__main__":
    # Small shapes consistent with the module.
    num_hidden = 32
    head_size = 32
    kq_expansion = 4
    v_expansion = 4
    num_heads = max(kq_expansion * num_hidden // head_size, 1)   # = 4
    n_kv, n_q = 8, 8
    nh_v = num_hidden * v_expansion       # 128
    nh_kq = num_hidden * kq_expansion     # 128

    key = jax.random.PRNGKey(0)
    keys = iter(jax.random.split(key, 24))

    kv = jax.random.normal(next(keys), (n_kv, num_hidden), jnp.float32)
    key_embedding = jax.random.normal(next(keys), (n_kv, 2), jnp.float32)
    query_embedding = jax.random.normal(next(keys), (n_q, 2), jnp.float32)

    def linear_params(k, fan_in, fan_out, scale=0.1):
        kw, kb = jax.random.split(k)
        w = jax.random.normal(kw, (fan_in, fan_out), jnp.float32) * scale
        b = jax.random.normal(kb, (1, fan_out), jnp.float32) * scale
        return w, b

    # Natural-layout params: (in, out) weights, (1, out) biases, LN g/b.
    params = {}
    params["q_w1"], params["q_b1"] = linear_params(next(keys), 2, 32)
    params["q_w2"], params["q_b2"] = linear_params(next(keys), 32, 32)
    params["q_w3"], params["q_b3"] = linear_params(next(keys), 32, nh_kq)
    params["k_w1"], params["k_b1"] = linear_params(next(keys), 2, 32)
    params["k_w2"], params["k_b2"] = linear_params(next(keys), 32, 32)
    params["k_w3"], params["k_b3"] = linear_params(next(keys), 32, nh_v)
    params["v_w1"], params["v_b1"] = linear_params(next(keys), 2, 32)
    params["v_w2"], params["v_b2"] = linear_params(next(keys), 32, 32)
    params["v_w3"], params["v_b3"] = linear_params(next(keys), 32, nh_v)
    params["kk_w"], params["kk_b"] = linear_params(next(keys), num_hidden, nh_v)
    params["vv_w"], params["vv_b"] = linear_params(next(keys), num_hidden, nh_v)
    params["km_w1"], params["km_b1"] = linear_params(next(keys), 2 * nh_v, nh_v)
    params["km_w2"], params["km_b2"] = linear_params(next(keys), nh_v, nh_kq)
    params["o_w"], params["o_b"] = linear_params(next(keys), nh_v, num_hidden)
    params["kk_ln_g"] = 1.0 + 0.1 * jax.random.normal(next(keys), (1, num_hidden), jnp.float32)
    params["kk_ln_b"] = 0.1 * jax.random.normal(next(keys), (1, num_hidden), jnp.float32)
    params["vv_ln_g"] = 1.0 + 0.1 * jax.random.normal(next(keys), (1, num_hidden), jnp.float32)
    params["vv_ln_b"] = 0.1 * jax.random.normal(next(keys), (1, num_hidden), jnp.float32)

    # One-time host-side folding / fusion / slab packing.
    w_slab, b_slab, w_layout, b_layout, dims = pack_params(params)

    fwd = jax.jit(functools.partial(
        sparse_mask_attention_forward,
        w_layout=w_layout, b_layout=b_layout, num_heads=num_heads,
        num_hidden=dims["num_hidden"], nh_v=dims["nh_v"], nh_kq=dims["nh_kq"]))

    out = fwd(kv, key_embedding, query_embedding, w_slab, b_slab)
    out = jax.block_until_ready(out)

    ref = reference_forward(kv, key_embedding, query_embedding, params,
                            num_heads=num_heads)
    assert out.shape == (n_q, num_hidden)
    # Only deviations from the exact reference: folded-LN rounding and the EUP
    # approximate reciprocal in the deferred softmax normalization (~2^-12 rel).
    max_err = jnp.max(jnp.abs(out - ref))
    assert jnp.allclose(out, ref, atol=2e-3, rtol=2e-3), (
        f"max abs err = {max_err}")

    print("KERNEL_OK")
</pallas_src>

<mosaic_0001>
module attributes {stable_mosaic.version = 11 : i64} {
  func.func @_sparse_mask_attention_kernel(%arg0: memref<8x32xf32, #tpu.memory_space<vmem>>, %arg1: memref<8x2xf32, #tpu.memory_space<vmem>>, %arg2: memref<8x2xf32, #tpu.memory_space<vmem>>, %arg3: memref<752x256xf32, #tpu.memory_space<vmem>>, %arg4: memref<16x256xf32, #tpu.memory_space<vmem>>, %arg5: memref<8x32xf32, #tpu.memory_space<vmem>>) attributes {dimension_semantics = [], scalar_prefetch = 0 : i64, scratch_operands = 0 : i64, tpu.core_type = #tpu.core_type<tc>} {
    %c0 = arith.constant 0 : index
    %c0_0 = arith.constant 0 : index
    %0 = vector.load %arg0[%c0, %c0_0] : memref<8x32xf32, #tpu.memory_space<vmem>>, vector<8x32xf32>
    %c0_1 = arith.constant 0 : index
    %c0_2 = arith.constant 0 : index
    %1 = vector.load %arg1[%c0_1, %c0_2] : memref<8x2xf32, #tpu.memory_space<vmem>>, vector<8x2xf32>
    %c0_3 = arith.constant 0 : index
    %c0_4 = arith.constant 0 : index
    %2 = vector.load %arg2[%c0_3, %c0_4] : memref<8x2xf32, #tpu.memory_space<vmem>>, vector<8x2xf32>
    %cst = arith.constant dense<0.000000e+00> : vector<8xf32>
    %3 = vector.multi_reduction <add>, %0, %cst [1] : vector<8x32xf32> to vector<8xf32>
    %4 = vector.shape_cast %3 : vector<8xf32> to vector<8x1xf32>
    %cst_5 = arith.constant 3.200000e+01 : f32
    %5 = vector.broadcast %cst_5 : f32 to vector<8x1xf32>
    %6 = arith.divf %4, %5 : vector<8x1xf32>
    %7 = vector.broadcast %6 : vector<8x1xf32> to vector<8x32xf32>
    %8 = arith.subf %0, %7 : vector<8x32xf32>
    %9 = arith.mulf %8, %8 : vector<8x32xf32>
    %cst_6 = arith.constant dense<0.000000e+00> : vector<8xf32>
    %10 = vector.multi_reduction <add>, %9, %cst_6 [1] : vector<8x32xf32> to vector<8xf32>
    %11 = vector.shape_cast %10 : vector<8xf32> to vector<8x1xf32>
    %cst_7 = arith.constant 3.200000e+01 : f32
    %12 = vector.broadcast %cst_7 : f32 to vector<8x1xf32>
    %13 = arith.divf %11, %12 : vector<8x1xf32>
    %cst_8 = arith.constant 9.99999974E-6 : f32
    %14 = vector.broadcast %cst_8 : f32 to vector<8x1xf32>
    %15 = arith.addf %13, %14 : vector<8x1xf32>
    %16 = math.rsqrt %15 : vector<8x1xf32>
    %17 = vector.broadcast %16 : vector<8x1xf32> to vector<8x32xf32>
    %18 = arith.mulf %8, %17 : vector<8x32xf32>
    %c0_9 = arith.constant 0 : index
    %c0_10 = arith.constant 0 : index
    %19 = vector.load %arg3[%c0_9, %c0_10] : memref<752x256xf32, #tpu.memory_space<vmem>>, vector<32x256xf32>
    %cst_11 = arith.constant dense<0.000000e+00> : vector<8x256xf32>
    %20 = tpu.matmul %18, %19, %cst_11 {dimension_numbers = #tpu.dot_dimension_numbers<[1], [0], [0], [1], [0, 0, 1, 1], [], []>} : vector<8x32xf32>, vector<32x256xf32>, vector<8x256xf32> -> vector<8x256xf32>
    %c0_12 = arith.constant 0 : index
    %c0_13 = arith.constant 0 : index
    %21 = vector.load %arg4[%c0_12, %c0_13] : memref<16x256xf32, #tpu.memory_space<vmem>>, vector<1x256xf32>
    %22 = vector.broadcast %21 : vector<1x256xf32> to vector<8x256xf32>
    %23 = arith.addf %20, %22 : vector<8x256xf32>
    %24 = vector.extract_strided_slice %23 {offsets = [0, 0], sizes = [8, 128], strides = [1, 1]} : vector<8x256xf32> to vector<8x128xf32>
    %25 = vector.extract_strided_slice %23 {offsets = [0, 128], sizes = [8, 128], strides = [1, 1]} : vector<8x256xf32> to vector<8x128xf32>
    %c32 = arith.constant 32 : index
    %c0_14 = arith.constant 0 : index
    %26 = vector.load %arg3[%c32, %c0_14] : memref<752x256xf32, #tpu.memory_space<vmem>>, vector<2x64xf32>
    %27 = vector.extract_strided_slice %1 {offsets = [0, 0], sizes = [8, 1], strides = [1, 1]} : vector<8x2xf32> to vector<8x1xf32>
    %28 = vector.extract_strided_slice %26 {offsets = [0, 0], sizes = [1, 64], strides = [1, 1]} : vector<2x64xf32> to vector<1x64xf32>
    %29 = vector.broadcast %27 : vector<8x1xf32> to vector<8x64xf32>
    %30 = vector.broadcast %28 : vector<1x64xf32> to vector<8x64xf32>
    %31 = arith.mulf %29, %30 : vector<8x64xf32>
    %32 = vector.extract_strided_slice %1 {offsets = [0, 1], sizes = [8, 1], strides = [1, 1]} : vector<8x2xf32> to vector<8x1xf32>
    %33 = vector.extract_strided_slice %26 {offsets = [1, 0], sizes = [1, 64], strides = [1, 1]} : vector<2x64xf32> to vector<1x64xf32>
    %34 = vector.broadcast %32 : vector<8x1xf32> to vector<8x64xf32>
    %35 = vector.broadcast %33 : vector<1x64xf32> to vector<8x64xf32>
    %36 = arith.mulf %34, %35 : vector<8x64xf32>
    %37 = arith.addf %31, %36 : vector<8x64xf32>
    %c1 = arith.constant 1 : index
    %c0_15 = arith.constant 0 : index
    %38 = vector.load %arg4[%c1, %c0_15] : memref<16x256xf32, #tpu.memory_space<vmem>>, vector<1x64xf32>
    %39 = vector.broadcast %38 : vector<1x64xf32> to vector<8x64xf32>
    %40 = arith.addf %37, %39 : vector<8x64xf32>
    %41 = arith.negf %40 : vector<8x64xf32>
    %42 = math.exp %41 : vector<8x64xf32>
    %cst_16 = arith.constant 1.000000e+00 : f32
    %43 = vector.broadcast %cst_16 : f32 to vector<8x64xf32>
    %44 = arith.addf %43, %42 : vector<8x64xf32>
    %45 = arith.divf %43, %44 : vector<8x64xf32>
    %46 = arith.mulf %40, %45 : vector<8x64xf32>
    %c40 = arith.constant 40 : index
    %c0_17 = arith.constant 0 : index
    %47 = vector.load %arg3[%c40, %c0_17] : memref<752x256xf32, #tpu.memory_space<vmem>>, vector<64x64xf32>
    %cst_18 = arith.constant dense<0.000000e+00> : vector<8x64xf32>
    %48 = tpu.matmul %46, %47, %cst_18 {dimension_numbers = #tpu.dot_dimension_numbers<[1], [0], [0], [1], [0, 0, 1, 1], [], []>} : vector<8x64xf32>, vector<64x64xf32>, vector<8x64xf32> -> vector<8x64xf32>
    %c2 = arith.constant 2 : index
    %c0_19 = arith.constant 0 : index
    %49 = vector.load %arg4[%c2, %c0_19] : memref<16x256xf32, #tpu.memory_space<vmem>>, vector<1x64xf32>
    %50 = vector.broadcast %49 : vector<1x64xf32> to vector<8x64xf32>
    %51 = arith.addf %48, %50 : vector<8x64xf32>
    %52 = arith.negf %51 : vector<8x64xf32>
    %53 = math.exp %52 : vector<8x64xf32>
    %cst_20 = arith.constant 1.000000e+00 : f32
    %54 = vector.broadcast %cst_20 : f32 to vector<8x64xf32>
    %55 = arith.addf %54, %53 : vector<8x64xf32>
    %56 = arith.divf %54, %55 : vector<8x64xf32>
    %57 = arith.mulf %51, %56 : vector<8x64xf32>
    %c104 = arith.constant 104 : index
    %c0_21 = arith.constant 0 : index
    %58 = vector.load %arg3[%c104, %c0_21] : memref<752x256xf32, #tpu.memory_space<vmem>>, vector<64x256xf32>
    %cst_22 = arith.constant dense<0.000000e+00> : vector<8x256xf32>
    %59 = tpu.matmul %57, %58, %cst_22 {dimension_numbers = #tpu.dot_dimension_numbers<[1], [0], [0], [1], [0, 0, 1, 1], [], []>} : vector<8x64xf32>, vector<64x256xf32>, vector<8x256xf32> -> vector<8x256xf32>
    %c3 = arith.constant 3 : index
    %c0_23 = arith.constant 0 : index
    %60 = vector.load %arg4[%c3, %c0_23] : memref<16x256xf32, #tpu.memory_space<vmem>>, vector<1x256xf32>
    %61 = vector.broadcast %60 : vector<1x256xf32> to vector<8x256xf32>
    %62 = arith.addf %59, %61 : vector<8x256xf32>
    %63 = vector.extract_strided_slice %62 {offsets = [0, 0], sizes = [8, 128], strides = [1, 1]} : vector<8x256xf32> to vector<8x128xf32>
    %64 = vector.extract_strided_slice %62 {offsets = [0, 128], sizes = [8, 128], strides = [1, 1]} : vector<8x256xf32> to vector<8x128xf32>
    %c168 = arith.constant 168 : index
    %c0_24 = arith.constant 0 : index
    %65 = vector.load %arg3[%c168, %c0_24] : memref<752x256xf32, #tpu.memory_space<vmem>>, vector<2x32xf32>
    %66 = vector.extract_strided_slice %2 {offsets = [0, 0], sizes = [8, 1], strides = [1, 1]} : vector<8x2xf32> to vector<8x1xf32>
    %67 = vector.extract_strided_slice %65 {offsets = [0, 0], sizes = [1, 32], strides = [1, 1]} : vector<2x32xf32> to vector<1x32xf32>
    %68 = vector.broadcast %66 : vector<8x1xf32> to vector<8x32xf32>
    %69 = vector.broadcast %67 : vector<1x32xf32> to vector<8x32xf32>
    %70 = arith.mulf %68, %69 : vector<8x32xf32>
    %71 = vector.extract_strided_slice %2 {offsets = [0, 1], sizes = [8, 1], strides = [1, 1]} : vector<8x2xf32> to vector<8x1xf32>
    %72 = vector.extract_strided_slice %65 {offsets = [1, 0], sizes = [1, 32], strides = [1, 1]} : vector<2x32xf32> to vector<1x32xf32>
    %73 = vector.broadcast %71 : vector<8x1xf32> to vector<8x32xf32>
    %74 = vector.broadcast %72 : vector<1x32xf32> to vector<8x32xf32>
    %75 = arith.mulf %73, %74 : vector<8x32xf32>
    %76 = arith.addf %70, %75 : vector<8x32xf32>
    %c4 = arith.constant 4 : index
    %c0_25 = arith.constant 0 : index
    %77 = vector.load %arg4[%c4, %c0_25] : memref<16x256xf32, #tpu.memory_space<vmem>>, vector<1x32xf32>
    %78 = vector.broadcast %77 : vector<1x32xf32> to vector<8x32xf32>
    %79 = arith.addf %76, %78 : vector<8x32xf32>
    %80 = arith.negf %79 : vector<8x32xf32>
    %81 = math.exp %80 : vector<8x32xf32>
    %cst_26 = arith.constant 1.000000e+00 : f32
    %82 = vector.broadcast %cst_26 : f32 to vector<8x32xf32>
    %83 = arith.addf %82, %81 : vector<8x32xf32>
    %84 = arith.divf %82, %83 : vector<8x32xf32>
    %85 = arith.mulf %79, %84 : vector<8x32xf32>
    %c176 = arith.constant 176 : index
    %c0_27 = arith.constant 0 : index
    %86 = vector.load %arg3[%c176, %c0_27] : memref<752x256xf32, #tpu.memory_space<vmem>>, vector<32x32xf32>
    %cst_28 = arith.constant dense<0.000000e+00> : vector<8x32xf32>
    %87 = tpu.matmul %85, %86, %cst_28 {dimension_numbers = #tpu.dot_dimension_numbers<[1], [0], [0], [1], [0, 0, 1, 1], [], []>} : vector<8x32xf32>, vector<32x32xf32>, vector<8x32xf32> -> vector<8x32xf32>
    %c5 = arith.constant 5 : index
    %c0_29 = arith.constant 0 : index
    %88 = vector.load %arg4[%c5, %c0_29] : memref<16x256xf32, #tpu.memory_space<vmem>>, vector<1x32xf32>
    %89 = vector.broadcast %88 : vector<1x32xf32> to vector<8x32xf32>
    %90 = arith.addf %87, %89 : vector<8x32xf32>
    %91 = arith.negf %90 : vector<8x32xf32>
    %92 = math.exp %91 : vector<8x32xf32>
    %cst_30 = arith.constant 1.000000e+00 : f32
    %93 = vector.broadcast %cst_30 : f32 to vector<8x32xf32>
    %94 = arith.addf %93, %92 : vector<8x32xf32>
    %95 = arith.divf %93, %94 : vector<8x32xf32>
    %96 = arith.mulf %90, %95 : vector<8x32xf32>
    %c208 = arith.constant 208 : index
    %c0_31 = arith.constant 0 : index
    %97 = vector.load %arg3[%c208, %c0_31] : memref<752x256xf32, #tpu.memory_space<vmem>>, vector<32x128xf32>
    %cst_32 = arith.constant dense<0.000000e+00> : vector<8x128xf32>
    %98 = tpu.matmul %96, %97, %cst_32 {dimension_numbers = #tpu.dot_dimension_numbers<[1], [0], [0], [1], [0, 0, 1, 1], [], []>} : vector<8x32xf32>, vector<32x128xf32>, vector<8x128xf32> -> vector<8x128xf32>
    %c6 = arith.constant 6 : index
    %c0_33 = arith.constant 0 : index
    %99 = vector.load %arg4[%c6, %c0_33] : memref<16x256xf32, #tpu.memory_space<vmem>>, vector<1x128xf32>
    %100 = vector.broadcast %99 : vector<1x128xf32> to vector<8x128xf32>
    %101 = arith.addf %98, %100 : vector<8x128xf32>
    %102 = tpu.concatenate %24, %63 in 1 : vector<8x128xf32>, vector<8x128xf32> -> vector<8x256xf32>
    %c240 = arith.constant 240 : index
    %c0_34 = arith.constant 0 : index
    %103 = vector.load %arg3[%c240, %c0_34] : memref<752x256xf32, #tpu.memory_space<vmem>>, vector<256x128xf32>
    %cst_35 = arith.constant dense<0.000000e+00> : vector<8x128xf32>
    %104 = tpu.matmul %102, %103, %cst_35 {dimension_numbers = #tpu.dot_dimension_numbers<[1], [0], [0], [1], [0, 0, 1, 1], [], []>} : vector<8x256xf32>, vector<256x128xf32>, vector<8x128xf32> -> vector<8x128xf32>
    %c7 = arith.constant 7 : index
    %c0_36 = arith.constant 0 : index
    %105 = vector.load %arg4[%c7, %c0_36] : memref<16x256xf32, #tpu.memory_space<vmem>>, vector<1x128xf32>
    %106 = vector.broadcast %105 : vector<1x128xf32> to vector<8x128xf32>
    %107 = arith.addf %104, %106 : vector<8x128xf32>
    %108 = arith.negf %107 : vector<8x128xf32>
    %109 = math.exp %108 : vector<8x128xf32>
    %cst_37 = arith.constant 1.000000e+00 : f32
    %110 = vector.broadcast %cst_37 : f32 to vector<8x128xf32>
    %111 = arith.addf %110, %109 : vector<8x128xf32>
    %112 = arith.divf %110, %111 : vector<8x128xf32>
    %113 = arith.mulf %107, %112 : vector<8x128xf32>
    %c496 = arith.constant 496 : index
    %c0_38 = arith.constant 0 : index
    %114 = vector.load %arg3[%c496, %c0_38] : memref<752x256xf32, #tpu.memory_space<vmem>>, vector<128x128xf32>
    %cst_39 = arith.constant dense<0.000000e+00> : vector<8x128xf32>
    %115 = tpu.matmul %113, %114, %cst_39 {dimension_numbers = #tpu.dot_dimension_numbers<[1], [0], [0], [1], [0, 0, 1, 1], [], []>} : vector<8x128xf32>, vector<128x128xf32>, vector<8x128xf32> -> vector<8x128xf32>
    %c8 = arith.constant 8 : index
    %c0_40 = arith.constant 0 : index
    %116 = vector.load %arg4[%c8, %c0_40] : memref<16x256xf32, #tpu.memory_space<vmem>>, vector<1x128xf32>
    %117 = vector.broadcast %116 : vector<1x128xf32> to vector<8x128xf32>
    %118 = arith.addf %115, %117 : vector<8x128xf32>
    %119 = arith.addf %25, %64 : vector<8x128xf32>
    %cst_41 = arith.constant 0.176776692 : f32
    %120 = vector.broadcast %cst_41 : f32 to vector<8x128xf32>
    %121 = arith.mulf %101, %120 : vector<8x128xf32>
    %122 = vector.extract_strided_slice %121 {offsets = [0, 0], sizes = [8, 32], strides = [1, 1]} : vector<8x128xf32> to vector<8x32xf32>
    %123 = vector.extract_strided_slice %118 {offsets = [0, 0], sizes = [8, 32], strides = [1, 1]} : vector<8x128xf32> to vector<8x32xf32>
    %124 = vector.extract_strided_slice %119 {offsets = [0, 0], sizes = [8, 32], strides = [1, 1]} : vector<8x128xf32> to vector<8x32xf32>
    %cst_42 = arith.constant dense<0.000000e+00> : vector<8x8xf32>
    %125 = tpu.matmul %122, %123, %cst_42 {dimension_numbers = #tpu.dot_dimension_numbers<[1], [1], [0], [0], [0, 0, 1, 0], [], []>} : vector<8x32xf32>, vector<8x32xf32>, vector<8x8xf32> -> vector<8x8xf32>
    %cst_43 = arith.constant dense<0xFF800000> : vector<8xf32>
    %126 = vector.multi_reduction <maximumf>, %125, %cst_43 [1] : vector<8x8xf32> to vector<8xf32>
    %127 = vector.shape_cast %126 : vector<8xf32> to vector<8x1xf32>
    %128 = vector.broadcast %127 : vector<8x1xf32> to vector<8x8xf32>
    %129 = arith.subf %125, %128 : vector<8x8xf32>
    %130 = math.exp %129 : vector<8x8xf32>
    %cst_44 = arith.constant dense<0.000000e+00> : vector<8xf32>
    %131 = vector.multi_reduction <add>, %130, %cst_44 [1] : vector<8x8xf32> to vector<8xf32>
    %132 = vector.shape_cast %131 : vector<8xf32> to vector<8x1xf32>
    %cst_45 = arith.constant dense<0.000000e+00> : vector<8x32xf32>
    %133 = tpu.matmul %130, %124, %cst_45 {dimension_numbers = #tpu.dot_dimension_numbers<[1], [0], [0], [1], [0, 0, 1, 1], [], []>} : vector<8x8xf32>, vector<8x32xf32>, vector<8x32xf32> -> vector<8x32xf32>
    %134 = tpu.reciprocal %132 {approx = true} : vector<8x1xf32> -> vector<8x1xf32>
    %135 = vector.broadcast %134 : vector<8x1xf32> to vector<8x32xf32>
    %136 = arith.mulf %133, %135 : vector<8x32xf32>
    %137 = vector.extract_strided_slice %121 {offsets = [0, 32], sizes = [8, 32], strides = [1, 1]} : vector<8x128xf32> to vector<8x32xf32>
    %138 = vector.extract_strided_slice %118 {offsets = [0, 32], sizes = [8, 32], strides = [1, 1]} : vector<8x128xf32> to vector<8x32xf32>
    %139 = vector.extract_strided_slice %119 {offsets = [0, 32], sizes = [8, 32], strides = [1, 1]} : vector<8x128xf32> to vector<8x32xf32>
    %cst_46 = arith.constant dense<0.000000e+00> : vector<8x8xf32>
    %140 = tpu.matmul %137, %138, %cst_46 {dimension_numbers = #tpu.dot_dimension_numbers<[1], [1], [0], [0], [0, 0, 1, 0], [], []>} : vector<8x32xf32>, vector<8x32xf32>, vector<8x8xf32> -> vector<8x8xf32>
    %cst_47 = arith.constant dense<0xFF800000> : vector<8xf32>
    %141 = vector.multi_reduction <maximumf>, %140, %cst_47 [1] : vector<8x8xf32> to vector<8xf32>
    %142 = vector.shape_cast %141 : vector<8xf32> to vector<8x1xf32>
    %143 = vector.broadcast %142 : vector<8x1xf32> to vector<8x8xf32>
    %144 = arith.subf %140, %143 : vector<8x8xf32>
    %145 = math.exp %144 : vector<8x8xf32>
    %cst_48 = arith.constant dense<0.000000e+00> : vector<8xf32>
    %146 = vector.multi_reduction <add>, %145, %cst_48 [1] : vector<8x8xf32> to vector<8xf32>
    %147 = vector.shape_cast %146 : vector<8xf32> to vector<8x1xf32>
    %cst_49 = arith.constant dense<0.000000e+00> : vector<8x32xf32>
    %148 = tpu.matmul %145, %139, %cst_49 {dimension_numbers = #tpu.dot_dimension_numbers<[1], [0], [0], [1], [0, 0, 1, 1], [], []>} : vector<8x8xf32>, vector<8x32xf32>, vector<8x32xf32> -> vector<8x32xf32>
    %149 = tpu.reciprocal %147 {approx = true} : vector<8x1xf32> -> vector<8x1xf32>
    %150 = vector.broadcast %149 : vector<8x1xf32> to vector<8x32xf32>
    %151 = arith.mulf %148, %150 : vector<8x32xf32>
    %152 = vector.extract_strided_slice %121 {offsets = [0, 64], sizes = [8, 32], strides = [1, 1]} : vector<8x128xf32> to vector<8x32xf32>
    %153 = vector.extract_strided_slice %118 {offsets = [0, 64], sizes = [8, 32], strides = [1, 1]} : vector<8x128xf32> to vector<8x32xf32>
    %154 = vector.extract_strided_slice %119 {offsets = [0, 64], sizes = [8, 32], strides = [1, 1]} : vector<8x128xf32> to vector<8x32xf32>
    %cst_50 = arith.constant dense<0.000000e+00> : vector<8x8xf32>
    %155 = tpu.matmul %152, %153, %cst_50 {dimension_numbers = #tpu.dot_dimension_numbers<[1], [1], [0], [0], [0, 0, 1, 0], [], []>} : vector<8x32xf32>, vector<8x32xf32>, vector<8x8xf32> -> vector<8x8xf32>
    %cst_51 = arith.constant dense<0xFF800000> : vector<8xf32>
    %156 = vector.multi_reduction <maximumf>, %155, %cst_51 [1] : vector<8x8xf32> to vector<8xf32>
    %157 = vector.shape_cast %156 : vector<8xf32> to vector<8x1xf32>
    %158 = vector.broadcast %157 : vector<8x1xf32> to vector<8x8xf32>
    %159 = arith.subf %155, %158 : vector<8x8xf32>
    %160 = math.exp %159 : vector<8x8xf32>
    %cst_52 = arith.constant dense<0.000000e+00> : vector<8xf32>
    %161 = vector.multi_reduction <add>, %160, %cst_52 [1] : vector<8x8xf32> to vector<8xf32>
    %162 = vector.shape_cast %161 : vector<8xf32> to vector<8x1xf32>
    %cst_53 = arith.constant dense<0.000000e+00> : vector<8x32xf32>
    %163 = tpu.matmul %160, %154, %cst_53 {dimension_numbers = #tpu.dot_dimension_numbers<[1], [0], [0], [1], [0, 0, 1, 1], [], []>} : vector<8x8xf32>, vector<8x32xf32>, vector<8x32xf32> -> vector<8x32xf32>
    %164 = tpu.reciprocal %162 {approx = true} : vector<8x1xf32> -> vector<8x1xf32>
    %165 = vector.broadcast %164 : vector<8x1xf32> to vector<8x32xf32>
    %166 = arith.mulf %163, %165 : vector<8x32xf32>
    %167 = vector.extract_strided_slice %121 {offsets = [0, 96], sizes = [8, 32], strides = [1, 1]} : vector<8x128xf32> to vector<8x32xf32>
    %168 = vector.extract_strided_slice %118 {offsets = [0, 96], sizes = [8, 32], strides = [1, 1]} : vector<8x128xf32> to vector<8x32xf32>
    %169 = vector.extract_strided_slice %119 {offsets = [0, 96], sizes = [8, 32], strides = [1, 1]} : vector<8x128xf32> to vector<8x32xf32>
    %cst_54 = arith.constant dense<0.000000e+00> : vector<8x8xf32>
    %170 = tpu.matmul %167, %168, %cst_54 {dimension_numbers = #tpu.dot_dimension_numbers<[1], [1], [0], [0], [0, 0, 1, 0], [], []>} : vector<8x32xf32>, vector<8x32xf32>, vector<8x8xf32> -> vector<8x8xf32>
    %cst_55 = arith.constant dense<0xFF800000> : vector<8xf32>
    %171 = vector.multi_reduction <maximumf>, %170, %cst_55 [1] : vector<8x8xf32> to vector<8xf32>
    %172 = vector.shape_cast %171 : vector<8xf32> to vector<8x1xf32>
    %173 = vector.broadcast %172 : vector<8x1xf32> to vector<8x8xf32>
    %174 = arith.subf %170, %173 : vector<8x8xf32>
    %175 = math.exp %174 : vector<8x8xf32>
    %cst_56 = arith.constant dense<0.000000e+00> : vector<8xf32>
    %176 = vector.multi_reduction <add>, %175, %cst_56 [1] : vector<8x8xf32> to vector<8xf32>
    %177 = vector.shape_cast %176 : vector<8xf32> to vector<8x1xf32>
    %cst_57 = arith.constant dense<0.000000e+00> : vector<8x32xf32>
    %178 = tpu.matmul %175, %169, %cst_57 {dimension_numbers = #tpu.dot_dimension_numbers<[1], [0], [0], [1], [0, 0, 1, 1], [], []>} : vector<8x8xf32>, vector<8x32xf32>, vector<8x32xf32> -> vector<8x32xf32>
    %179 = tpu.reciprocal %177 {approx = true} : vector<8x1xf32> -> vector<8x1xf32>
    %180 = vector.broadcast %179 : vector<8x1xf32> to vector<8x32xf32>
    %181 = arith.mulf %178, %180 : vector<8x32xf32>
    %182 = tpu.concatenate %136, %151, %166, %181 in 1 : vector<8x32xf32>, vector<8x32xf32>, vector<8x32xf32>, vector<8x32xf32> -> vector<8x128xf32>
    %c624 = arith.constant 624 : index
    %c0_58 = arith.constant 0 : index
    %183 = vector.load %arg3[%c624, %c0_58] : memref<752x256xf32, #tpu.memory_space<vmem>>, vector<128x32xf32>
    %cst_59 = arith.constant dense<0.000000e+00> : vector<8x32xf32>
    %184 = tpu.matmul %182, %183, %cst_59 {dimension_numbers = #tpu.dot_dimension_numbers<[1], [0], [0], [1], [0, 0, 1, 1], [], []>} : vector<8x128xf32>, vector<128x32xf32>, vector<8x32xf32> -> vector<8x32xf32>
    %c9 = arith.constant 9 : index
    %c0_60 = arith.constant 0 : index
    %185 = vector.load %arg4[%c9, %c0_60] : memref<16x256xf32, #tpu.memory_space<vmem>>, vector<1x32xf32>
    %186 = vector.broadcast %185 : vector<1x32xf32> to vector<8x32xf32>
    %187 = arith.addf %184, %186 : vector<8x32xf32>
    %c0_61 = arith.constant 0 : index
    %c0_62 = arith.constant 0 : index
    %188 = vector.load %arg5[%c0_61, %c0_62] : memref<8x32xf32, #tpu.memory_space<vmem>>, vector<8x32xf32>
    tpu.vector_store %arg5[%c0_61, %c0_62], %187 {strides = array<i32>} : memref<8x32xf32, #tpu.memory_space<vmem>>, vector<8x32xf32>,
    return
  }
}

</mosaic_0001>

<bundles_post_ra>
// kernel: sparse_mask_attention_forward.1
= control target key start
LH: loop header
LB: loop body
LE: loop exit
PB: predicated region body
PF: predicated region fallthrough
CT: control target
= control target key end

     0   :  { %10 = vsyncpa [#allocation3], 0  ;;  %s1153_s0 = inlined_call_operand.vmem [shape: f32[8,32], index: 0, kind: input, shape index: {}]   ;;  %s1154_s1 = inlined_call_operand.vmem [shape: f32[8,2], index: 1, kind: input, shape index: {}]   ;;  %s1155_s2 = inlined_call_operand.vmem [shape: f32[8,2], index: 2, kind: input, shape index: {}]   ;;  %s1156_s3 = inlined_call_operand.hbm [shape: f32[752,256], index: 3, kind: input, shape index: {}]   ;;  %s1157_s4 = inlined_call_operand.hbm [shape: f32[16,256], index: 4, kind: input, shape index: {}]   ;;  %s1158_s5 = inlined_call_operand.hbm [shape: f32[8,32], index: 5, kind: output, shape index: {}]  }
   0x1   :  { %11 = vsyncpa [#allocation6], 0 }
   0x2   :  { %12 = vsyncpa [#allocation4], 0  ;;  %s23_s20 = sshll.u32 %s1156_s3, 4  ;;  %s1030_s21 = smov [#allocation2]   ;;  %s24_s20 = int_to_ptr.hbm [resolvable:$true] %s23_s20 }
   0x3   :  { %s25_s22 = sshll.u32 %s1030_s21, 4  ;;  %s36_s25 = sshll.u32 %s1157_s4, 4  ;;  %s26_s22 = int_to_ptr.vmem [resolvable:$true] %s25_s22  ;;  %s37_s25 = int_to_ptr.hbm [resolvable:$true] %s36_s25 }
   0x4   :  { %s1031_s26 = smov 256   ;;  %s1032_s27 = smov 16  }
   0x5   :  { %31 = dma.hbm_to_vmem [thread:$0]  %s24_s20, 24064, %s26_s22, [#allocation3], %s1031_s26, %s1031_s26, %s1032_s27  }
   0x6   :  { %s1033_s28 = smov [#allocation5]  }
   0x7   :  { %s38_s29 = sshll.u32 %s1033_s28, 4  ;;  %s39_s29 = int_to_ptr.vmem [resolvable:$true] %s38_s29 }
   0x8   :  { %44 = dma.hbm_to_vmem [thread:$0]  %s37_s25, 512, %s39_s29, [#allocation6], %s1031_s26, %s1031_s26, %s1032_s27  }
   0x9   :  { %1024 = dma.done.wait [#allocation3], 24064  }
   0xa   :  { %1025 = vsyncadd [#allocation3], 4294943232 }
   0xb   :  { %1026 = dma.done.wait [#allocation6], 512  }
   0xc   :  { %1027 = vsyncadd [#allocation6], 4294966784  ;;  %v1034_v0 = vmov 0   ;;  %vm56_vm0 = vcmask 261120   ;;  %v54_v1 = vld [vmem:[%s1154_s1] sm:$0xff]  ;;  %v1035_v4 = vmov 1  }
   0xd   :  { %908 = vset.pattern.permute.xlu0 %v1034_v0  ;;  %910 = vset.pattern.permute.xlu2 %v1034_v0  ;;  %v53_v2 = vld [vmem:[%s1153_s0] sm:$0xff]  ;;  %v1036_v5 = vmov 32.0   ;;  %v186_v11 = vld [vmem:[#allocation2 + $0xb0] sm:$0xff]  ;;  %vm189_vm6 = vcmask 523264   ;;  %v93_v50 = vld [vmem:[#allocation2 + $0x38] sm:$0xff]  ;;  %s1038_s7 = smov 32  }
   0xe   :  { %146 = vperm.xlu0 %908, %v54_v1   ;;  %v57_v3 = vsel %vm56_vm0, %v53_v2, 0.0  ;;  %912 = vrcp.f32 %v1036_v5  ;;  %v187_v10 = vld [vmem:[#allocation2 + $0xc0] sm:$0xff]  ;;  %v184_v14 = vld [vmem:[#allocation2 + $0x90] sm:$0xff]  ;;  %135 = vmatpush.msra.mxu1 %v93_v50  ;;  %v91_v52 = vld [vmem:[#allocation2 + $0x28] sm:$0xff]  ;;  %s1039_s8 = smov 96   ;;  %s1040_s9 = smov [#allocation7]  }
   0xf   :  { %58 = vadd.xlane.f32.xlu1 %v57_v3  ;;  %201 = vmatpush.msra.mxu3 %v187_v10  ;;  %v185_v13 = vld [vmem:[#allocation2 + $0xa0] sm:$0xff]  ;;  %v182_v21 = vld [vmem:[#allocation2 + $0x70] sm:$0xff]  ;;  %v89_v54 = vld [vmem:[#allocation2 + $0x18] sm:$0xff]  ;;  %s860_s10 = sshll.u32 %s1040_s9, 4  ;;  %s862_s13 = sshll.u32 %s1158_s5, 4  ;;  %s861_s10 = int_to_ptr.vmem [resolvable:$true] %s860_s10  ;;  %s863_s13 = int_to_ptr.hbm [resolvable:$true] %s862_s13 }
  0x10   :  { %v183_v17 = vld [vmem:[#allocation2 + $0x80] sm:$0xff]  ;;  %v180_v27 = vld [vmem:[#allocation2 + $0x50] sm:$0xff]  ;;  %136 = vmatpush.msra.mxu1 %v91_v52  ;;  %v87_v57 = vld [vmem:[#allocation2 + $0x8] sm:$0xff] }
  0x11   :  { %202 = vmatpush.msra.mxu3 %v186_v11  ;;  %v143_v19 = vld [vmem:[#allocation2 + $0x40] sm:$0x3]  ;;  %v92_v49 = vld [vmem:[#allocation2 + $0x30] sm:$0xff]  ;;  %v244_v10 = vld [vmem:[#allocation2 + $0x128] sm:$0xff] }
  0x12   :  { %v181_v23 = vld [vmem:[#allocation2 + $0x60] sm:$0xff]  ;;  %v149_v24 = vperm.slane %v143_v19, 0  ;;  %v155_v25 = vperm.slane %v143_v19, 1  ;;  %115 = vmatpush.msra.mxu0 %v92_v49  ;;  %v88_v53 = vld [vmem:[#allocation2 + $0x10] sm:$0xff]  ;;  %137 = vmatpush.msra.mxu1 %v89_v54 }
  0x13   :  { %203 = vmatpush.msra.mxu3 %v185_v13  ;;  %v158_v32 = vld [vmem:[#allocation5 + $0x1] ss:$0 sm:$0xff]  ;;  %v241_v11 = vld [vmem:[#allocation2 + $0x110] sm:$0xff]  ;;  %v188_v19 = vld [vmem:[#allocation5 + $0x2] ss:$0 sm:$0xff] }
  0x14   :  { %v913_v6 = vpop.eup %912  ;;  %v90_v51 = vld [vmem:[#allocation2 + $0x20] sm:$0xff]  ;;  %138 = vmatpush.msra.mxu1 %v87_v57  ;;  %v425_v49 = vld [vmem:[#allocation2 + $0x2b0] sm:$0xff] }
  0x15   :  { %v61_v7 = vmul.f32 32.0, %v913_v6  ;;  %vm65_vm1 = vweird.f32 %v913_v6  ;;  %204 = vmatpush.msra.mxu3 %v184_v14  ;;  %116 = vmatpush.msra.mxu0 %v90_v51  ;;  %v55_v55 = vld [vmem:[%s1155_s2] sm:$0xff]  ;;  %v240_v14 = vld [vmem:[#allocation2 + $0x108] sm:$0xff]  ;;  %v423_v52 = vld [vmem:[#allocation2 + $0x290] sm:$0xff]  ;;  %s1037_s2 = smov 64  }
  0x16   :  { %909 = vset.pattern.permute.xlu0 %v1035_v4  ;;  %v86_v56 = vld [vmem:[#allocation2] sm:$0xff]  ;;  %302 = vperm.xlu2 %910, %v55_v55   ;;  %v419_v57 = vld [vmem:[#allocation2 + $0x250] sm:$0xff] }
  0x17   :  { %152 = vperm.xlu0 %909, %v54_v1   ;;  %v62_v8 = vsub.f32 1.0, %v61_v7  ;;  %205 = vmatpush.msra.mxu3 %v183_v17  ;;  %v245_v7 = vld [vmem:[#allocation2 + $0x130] sm:$0xff]  ;;  %v239_v13 = vld [vmem:[#allocation2 + $0x100] sm:$0xff] }
  0x18   :  { %117 = vmatpush.msra.mxu0 %v88_v53  ;;  %v235_v17 = vld [vmem:[#allocation2 + $0xe0] sm:$0xff] }
  0x19   :  { %v63_v9 = vmul.f32 %v913_v6, %v62_v8  ;;  %206 = vmatpush.msra.mxu3 %v182_v21  ;;  %v246_v8 = vld [vmem:[#allocation2 + $0x138] sm:$0xff]  ;;  %v424_v50 = vld [vmem:[#allocation2 + $0x2a0] sm:$0xff] }
  0x1a   :  { %118 = vmatpush.msra.mxu0 %v86_v56  ;;  %v234_v21 = vld [vmem:[#allocation2 + $0xd8] sm:$0xff]  ;;  %v422_v54 = vld [vmem:[#allocation2 + $0x280] sm:$0xff] }
  0x1b   :  { %v64_v12 = vadd.f32 %v913_v6, %v63_v9  ;;  %207 = vmatpush.msra.mxu3 %v181_v23  ;;  %v243_v9 = vld [vmem:[#allocation2 + $0x120] sm:$0xff] }
  0x1c   :  { %v420_v56 = vld [vmem:[#allocation2 + $0x260] sm:$0xff] }
  0x1d   :  { %v1085_v16 = vsel %vm65_vm1, %v913_v6, %v64_v12  ;;  %208 = vmatpush.msra.mxu3 %v180_v27  ;;  %v248_v6 = vld [vmem:[#allocation2 + $0x148] sm:$0xff]  ;;  %v242_v12 = vld [vmem:[#allocation2 + $0x118] sm:$0xff] }
  0x1e   :  { %911 = vset.pattern.permute.xlu2 %v1035_v4  ;;  %v247_v4 = vld [vmem:[#allocation2 + $0x140] sm:$0xff]  ;;  %287 = vmatpush.msrb.mxu0 %v248_v6 }
  0x1f   :  { %308 = vperm.xlu2 %911, %v55_v55   ;;  %267 = vmatpush.msrb.mxu3 %v247_v4  ;;  %v421_v55 = vld [vmem:[#allocation2 + $0x270] sm:$0xff] }
  0x20   :  { %288 = vmatpush.msrb.mxu0 %v246_v8 }
  0x21   :  { %268 = vmatpush.msrb.mxu3 %v245_v7  ;;  %v413_v7 = vld [vmem:[#allocation2 + $0x1f0] sm:$0xff] }
  0x22   :  { %289 = vmatpush.msrb.mxu0 %v244_v10  ;;  %v412_v10 = vld [vmem:[#allocation2 + $0x1e0] sm:$0xff] }
  0x23   :  { %269 = vmatpush.msrb.mxu3 %v243_v9 }
  0x24   :  { %290 = vmatpush.msrb.mxu0 %v242_v12  ;;  %v339_v12 = vld [vmem:[#allocation2 + $0x190] sm:$0xff] }
  0x25   :  { %270 = vmatpush.msrb.mxu3 %v241_v11  ;;  %356 = vmatpush.msrb.mxu1 %v339_v12  ;;  %v514_v12 = vld [vmem:[#allocation2 + $0x470] sm:$0xff] }
  0x26   :  { %291 = vmatpush.msrb.mxu0 %v240_v14 }
  0x27   :  { %271 = vmatpush.msrb.mxu3 %v239_v13  ;;  %v338_v13 = vld [vmem:[#allocation2 + $0x180] sm:$0xff] }
  0x28   :  { %357 = vmatpush.msrb.mxu1 %v338_v13  ;;  %v513_v13 = vld [vmem:[#allocation2 + $0x460] sm:$0xff] }
  0x80   :  { %v147_v15 = vpop.permute.xlu0 %146 }
  0x81   :  { %v150_v30 = vmul.f32 %v149_v24, %v147_v15  ;;  %v237_v15 = vld [vmem:[#allocation2 + $0xf0] sm:$0xff] }
  0x82   :  { %v59_v18 = vpop.xlane.xlu1 %58  ;;  %272 = vmatpush.msrb.mxu3 %v237_v15  ;;  %v427_v24 = vld [vmem:[#allocation2 + $0x2d0] sm:$0xff] }
  0x83   :  { %v67_v20 = vmul.f32 %v1085_v16, %v59_v18  ;;  %v236_v18 = vld [vmem:[#allocation2 + $0xe8] sm:$0xff]  ;;  %445 = vmatpush.msra.mxu2 %v427_v24  ;;  %v443_v15 = vld [vmem:[#allocation2 + $0x3d0] sm:$0xff] }
  0x84   :  { %273 = vmatpush.msrb.mxu3 %v235_v17  ;;  %v337_v17 = vld [vmem:[#allocation2 + $0x170] sm:$0xff] }
  0x85   :  { %v1088_v22 = vsub.f32 %v53_v2, %v67_v20  ;;  %v233_v20 = vld [vmem:[#allocation2 + $0xd0] sm:$0xff]  ;;  %358 = vmatpush.msrb.mxu1 %v337_v17  ;;  %v509_v17 = vld [vmem:[#allocation2 + $0x420] sm:$0xff] }
  0x86   :  { %274 = vmatpush.msrb.mxu3 %v233_v20  ;;  %v336_v20 = vld [vmem:[#allocation2 + $0x160] sm:$0xff]  ;;  %v437_v24 = vld [vmem:[#allocation2 + $0x370] sm:$0xff] }
  0x87   :  { %v69_v26 = vmul.f32 %v1088_v22, %v1088_v22  ;;  %359 = vmatpush.msrb.mxu1 %v336_v20  ;;  %v444_v20 = vld [vmem:[#allocation5 + $0x7] ss:$0 sm:$0xff] }
  0x89   :  { %v153_v28 = vpop.permute.xlu0 %152  ;;  %v70_v29 = vsel %vm56_vm0, %v69_v26, 0.0 }
  0x8a   :  { %v156_v31 = vmul.f32 %v155_v25, %v153_v28  ;;  %71 = vadd.xlane.f32.xlu1 %v70_v29  ;;  %v426_v25 = vld [vmem:[#allocation2 + $0x2c0] sm:$0xff] }
  0x8b   :  { %446 = vmatpush.msra.mxu2 %v426_v25  ;;  %v436_v25 = vld [vmem:[#allocation2 + $0x360] sm:$0xff] }
  0x8c   :  { %v157_v33 = vadd.f32 %v156_v31, %v150_v30 }
  0x8d   :  { %447 = vmatpush.msra.mxu2 %v425_v49  ;;  %v340_v49 = vld [vmem:[#allocation5 + $0x5] ss:$0 sm:$0xff] }
  0x8e   :  { %v159_v34 = vadd.f32 %v158_v32, %v157_v33 }
  0x8f   :  { %448 = vmatpush.msra.mxu2 %v424_v50  ;;  %v387_v50 = vld [vmem:[#allocation2 + $0x1d0] sm:$0xff] }
  0x90   :  { %v875_v35 = vmul.f32 -1.442695, %v159_v34 }
  0x91   :  { %449 = vmatpush.msra.mxu2 %v423_v52 }
  0x92   :  { %914 = vpow2.f32 %v875_v35 }
  0x93   :  { %450 = vmatpush.msra.mxu2 %v422_v54  ;;  %v385_v54 = vld [vmem:[#allocation2 + $0x1b0] sm:$0xff] }
  0x95   :  { %451 = vmatpush.msra.mxu2 %v421_v55 }
  0x97   :  { %452 = vmatpush.msra.mxu2 %v420_v56  ;;  %v384_v56 = vld [vmem:[#allocation2 + $0x1a0] sm:$0xff] }
  0x98   :  { %v915_v36 = vpop.eup %914 }
  0x99   :  { %v163_v37 = vadd.f32 1.0, %v915_v36  ;;  %v303_v36 = vpop.permute.xlu2 %302  ;;  %453 = vmatpush.msra.mxu2 %v419_v57 }
  0x9b   :  { %916 = vrcp.f32 %v163_v37  ;;  %v175_v41 = vand.u32 2147483648, %v163_v37  ;;  %v173_v43 = vand.u32 2147483647, %v163_v37  ;;  %vm169_vm3 = vweird.f32 %v163_v37 }
  0x9d   :  { %v176_v45 = vor.u32 1.1754944e-38, %v175_v41  ;;  %vm174_vm5 = vcmp.eq.f32.partialorder %v173_v43, 8.507059e+37 }
  0xa1   :  { %v917_v38 = vpop.eup %916 }
  0xa2   :  { %v165_v39 = vmul.f32 %v917_v38, %v163_v37  ;;  %vm170_vm2 = vweird.f32 %v917_v38 }
  0xa3   :  { %vm171_vm4 = vmor %vm169_vm3, %vm170_vm2 }
  0xa4   :  { %v166_v40 = vsub.f32 1.0, %v165_v39 }
  0xa6   :  { %v167_v42 = vmul.f32 %v917_v38, %v166_v40 }
  0xa8   :  { %v168_v44 = vadd.f32 %v917_v38, %v167_v42 }
  0xaa   :  { %v172_v46 = vsel %vm171_vm4, %v917_v38, %v168_v44  ;;  %v299_v38 = vld [vmem:[#allocation2 + $0x150] sm:$0x3] }
  0xab   :  { %v177_v47 = vsel %vm174_vm5, %v176_v45, %v172_v46  ;;  %v305_v42 = vperm.slane %v299_v38, 0  ;;  %v311_v43 = vperm.slane %v299_v38, 1  ;;  %v309_v45 = vpop.permute.xlu2 %308  ;;  %v250_v38 = vld [vmem:[#allocation5 + $0x3] ss:$8 sm:$0x3] }
  0xac   :  { %v179_v48 = vmul.f32 %v177_v47, %v159_v34  ;;  %v314_v47 = vld [vmem:[#allocation5 + $0x4] ss:$0 sm:$0xff] }
  0xad   :  { %v306_v44 = vmul.f32 %v305_v42, %v303_v36  ;;  %v312_v46 = vmul.f32 %v311_v43, %v309_v45  ;;  %v429_v36 = vld [vmem:[#allocation2 + $0x2f0] sm:$0xff] }
  0xae   :  { %876 = vmatmul.msk.f32.vlgmr.msra.gmra.mxu3 %vm189_vm6, %v179_v48 }
  0xaf   :  { %v313_v48 = vadd.f32 %v312_v46, %v306_v44  ;;  %465 = vmatpush.msra.mxu3 %v443_v15  ;;  %v252_v46 = vperm.slane %v250_v38, 0  ;;  %v511_v15 = vld [vmem:[#allocation2 + $0x440] sm:$0xff] }
  0xb1   :  { %v315_v51 = vadd.f32 %v314_v47, %v313_v48 }
  0xb3   :  { %v880_v53 = vmul.f32 -1.442695, %v315_v51 }
  0xfd   :  { %v72_v58 = vpop.xlane.xlu1 %71 }
  0xfe   :  { %v73_v59 = vmul.f32 %v72_v58, %v1085_v16  ;;  %v238_v16 = vld [vmem:[#allocation2 + $0xf8] sm:$0xff] }
  0xff   :  { %292 = vmatpush.msrb.mxu0 %v238_v16  ;;  %v442_v16 = vld [vmem:[#allocation2 + $0x3c0] sm:$0xff] }
 0x100   :  { %v74_v60 = vadd.f32 1e-05, %v73_v59  ;;  %v418_v59 = vld [vmem:[#allocation2 + $0x240] sm:$0xff]  ;;  %466 = vmatpush.msra.mxu3 %v442_v16  ;;  %v510_v16 = vld [vmem:[#allocation2 + $0x430] sm:$0xff] }
 0x101   :  { %293 = vmatpush.msrb.mxu0 %v236_v18  ;;  %454 = vmatpush.msra.mxu2 %v418_v59  ;;  %v441_v18 = vld [vmem:[#allocation2 + $0x3b0] sm:$0xff] }
 0x102   :  { %918 = vrsqrt.f32 %v74_v60  ;;  %vm81_vm7 = vweird.f32 %v74_v60  ;;  %467 = vmatpush.msra.mxu3 %v441_v18  ;;  %v508_v18 = vld [vmem:[#allocation2 + $0x410] sm:$0xff] }
 0x103   :  { %294 = vmatpush.msrb.mxu0 %v234_v21  ;;  %v440_v21 = vld [vmem:[#allocation2 + $0x3a0] sm:$0xff] }
 0x104   :  { %468 = vmatpush.msra.mxu3 %v440_v21 }
 0x108   :  { %v919_v61 = vpop.eup %918 }
 0x109   :  { %v76_v62 = vmul.f32 %v919_v61, %v74_v60  ;;  %vm82_vm8 = vweird.f32 %v919_v61 }
 0x10a   :  { %vm83_vm9 = vmor %vm81_vm7, %vm82_vm8 }
 0x10b   :  { %v77_v63 = vmul.f32 %v919_v61, %v76_v62  ;;  %v416_v62 = vld [vmem:[#allocation2 + $0x220] sm:$0xff] }
 0x10d   :  { %v78_v0 = vmul.f32 0.5, %v77_v63  ;;  %v415_v63 = vld [vmem:[#allocation2 + $0x210] sm:$0xff] }
 0x10f   :  { %v79_v1 = vsub.f32 1.5, %v78_v0  ;;  %v414_v0 = vld [vmem:[#allocation2 + $0x200] sm:$0xff] }
 0x111   :  { %v80_v2 = vmul.f32 %v919_v61, %v79_v1 }
 0x113   :  { %v84_v3 = vsel %vm83_vm9, %v919_v61, %v80_v2  ;;  %v417_v61 = vld [vmem:[#allocation2 + $0x230] sm:$0xff] }
 0x114   :  { %v85_v5 = vmul.f32 %v84_v3, %v1088_v22  ;;  %455 = vmatpush.msra.mxu2 %v417_v61 }
 0x116   :  { %873 = vmatmul.msk.f32.vlgmr.msra.gmra.mxu0 %vm56_vm0, %v85_v5  ;;  %874 = vmatmul.msk.f32.vlgmr.msra.gmra.mxu1 %vm56_vm0, %v85_v5 }
 0x117   :  { %456 = vmatpush.msra.mxu2 %v416_v62  ;;  %404 = vmatpush.msra.mxu1 %v387_v50 }
 0x119   :  { %457 = vmatpush.msra.mxu2 %v415_v63 }
 0x11b   :  { %458 = vmatpush.msra.mxu2 %v414_v0 }
 0x11d   :  { %459 = vmatpush.msra.mxu2 %v413_v7  ;;  %v519_v7 = vld [vmem:[#allocation2 + $0x4c0] sm:$0xff] }
 0x11f   :  { %460 = vmatpush.msra.mxu2 %v412_v10  ;;  %v516_v10 = vld [vmem:[#allocation2 + $0x490] sm:$0xff] }
 0x131   :  { %v210_v22 = vpop.f32.mrf.mxu3 }
 0x132   :  { %v211_v23 = vadd.f32 %v210_v22, %v188_v19  ;;  %v439_v22 = vld [vmem:[#allocation2 + $0x390] sm:$0xff] }
 0x133   :  { %469 = vmatpush.msra.mxu3 %v439_v22  ;;  %v506_v22 = vld [vmem:[#allocation2 + $0x3f0] sm:$0xff] }
 0x134   :  { %v877_v26 = vmul.f32 -1.442695, %v211_v23 }
 0x136   :  { %920 = vpow2.f32 %v877_v26  ;;  %v435_v26 = vld [vmem:[#allocation2 + $0x350] sm:$0xff] }
 0x13c   :  { %v921_v27 = vpop.eup %920 }
 0x13d   :  { %v216_v28 = vadd.f32 1.0, %v921_v27  ;;  %v434_v27 = vld [vmem:[#allocation2 + $0x340] sm:$0xff] }
 0x13f   :  { %922 = vrcp.f32 %v216_v28  ;;  %v228_v32 = vand.u32 2147483648, %v216_v28  ;;  %v226_v34 = vand.u32 2147483647, %v216_v28  ;;  %vm222_vm11 = vweird.f32 %v216_v28 }
 0x140   :  { %924 = vpow2.f32 %v880_v53 }
 0x141   :  { %v229_v37 = vor.u32 1.1754944e-38, %v228_v32  ;;  %vm227_vm13 = vcmp.eq.f32.partialorder %v226_v34, 8.507059e+37  ;;  %v431_v34 = vld [vmem:[#allocation2 + $0x310] sm:$0xff] }
 0x145   :  { %v923_v29 = vpop.eup %922 }
 0x146   :  { %v218_v30 = vmul.f32 %v923_v29, %v216_v28  ;;  %vm223_vm10 = vweird.f32 %v923_v29  ;;  %v925_v58 = vpop.eup %924  ;;  %v433_v28 = vld [vmem:[#allocation2 + $0x330] sm:$0xff] }
 0x147   :  { %vm224_vm12 = vmor %vm222_vm11, %vm223_vm10  ;;  %v319_v60 = vadd.f32 1.0, %v925_v58 }
 0x148   :  { %v219_v31 = vsub.f32 1.0, %v218_v30 }
 0x149   :  { %926 = vrcp.f32 %v319_v60  ;;  %v331_v3 = vand.u32 2147483648, %v319_v60  ;;  %vm325_vm14 = vweird.f32 %v319_v60  ;;  %v329_v4 = vand.u32 2147483647, %v319_v60 }
 0x14a   :  { %v220_v33 = vmul.f32 %v923_v29, %v219_v31 }
 0x14b   :  { %v332_v8 = vor.u32 1.1754944e-38, %v331_v3  ;;  %vm330_vm2 = vcmp.eq.f32.partialorder %v329_v4, 8.507059e+37 }
 0x14c   :  { %v221_v35 = vadd.f32 %v923_v29, %v220_v33  ;;  %v432_v33 = vld [vmem:[#allocation2 + $0x320] sm:$0xff] }
 0x14e   :  { %v225_v39 = vsel %vm224_vm12, %v923_v29, %v221_v35  ;;  %v94_v29 = vld [vmem:[#allocation5] ss:$8 sm:$0x3]  ;;  %vm570_vm12 = vcmask 64512  }
 0x14f   :  { %v230_v40 = vsel %vm227_vm13, %v229_v37, %v225_v39  ;;  %v927_v1 = vpop.eup %926  ;;  %v96_v30 = vperm.slane %v94_v29, 0  ;;  %v430_v35 = vld [vmem:[#allocation2 + $0x300] sm:$0xff]  ;;  %v97_v39 = vperm.slane %v94_v29, 1  ;;  %vm815_vm13 = vcmask 785408  }
 0x150   :  { %v232_v41 = vmul.f32 %v230_v40, %v211_v23  ;;  %v321_v2 = vmul.f32 %v927_v1, %v319_v60  ;;  %vm326_vm15 = vweird.f32 %v927_v1  ;;  %v438_v23 = vld [vmem:[#allocation2 + $0x380] sm:$0xff]  ;;  %v253_v40 = vperm.slane %v250_v38, 1 }
 0x151   :  { %vm327_vm1 = vmor %vm325_vm14, %vm326_vm15  ;;  %470 = vmatpush.msra.mxu3 %v438_v23  ;;  %v428_v37 = vld [vmem:[#allocation2 + $0x2e0] sm:$0xff] }
 0x152   :  { %878 = vmatmul.msk.f32.vlgmr.msrb.gmra.mxu3 %vm189_vm6, %v232_v41  ;;  %879 = vmatmul.msk.f32.vlgmr.msrb.gmra.mxu0 %vm189_vm6, %v232_v41  ;;  %v322_v5 = vsub.f32 1.0, %v321_v2 }
 0x153   :  { %471 = vmatpush.msra.mxu3 %v437_v24  ;;  %v505_v24 = vld [vmem:[#allocation2 + $0x3e0] sm:$0xff] }
 0x154   :  { %v323_v6 = vmul.f32 %v927_v1, %v322_v5 }
 0x155   :  { %472 = vmatpush.msra.mxu3 %v436_v25 }
 0x156   :  { %v324_v9 = vadd.f32 %v927_v1, %v323_v6  ;;  %v520_v6 = vld [vmem:[#allocation2 + $0x4d0] sm:$0xff] }
 0x157   :  { %473 = vmatpush.msra.mxu3 %v435_v26  ;;  %522 = vmatpush.msra.mxu0 %v520_v6 }
 0x158   :  { %v328_v11 = vsel %vm327_vm1, %v927_v1, %v324_v9  ;;  %v517_v9 = vld [vmem:[#allocation2 + $0x4a0] sm:$0xff] }
 0x159   :  { %v333_v14 = vsel %vm330_vm2, %v332_v8, %v328_v11  ;;  %474 = vmatpush.msra.mxu3 %v434_v27  ;;  %523 = vmatpush.msra.mxu0 %v519_v7  ;;  %v518_v8 = vld [vmem:[#allocation2 + $0x4b0] sm:$0xff]  ;;  %v515_v11 = vld [vmem:[#allocation2 + $0x480] sm:$0xff] }
 0x15a   :  { %v335_v19 = vmul.f32 %v333_v14, %v315_v51  ;;  %v386_v51 = vld [vmem:[#allocation2 + $0x1c0] sm:$0xff]  ;;  %v512_v14 = vld [vmem:[#allocation2 + $0x450] sm:$0xff] }
 0x15b   :  { %475 = vmatpush.msra.mxu3 %v433_v28  ;;  %405 = vmatpush.msra.mxu1 %v386_v51 }
 0x15c   :  { %881 = vmatmul.msk.f32.vlgmr.msrb.gmra.mxu1 %vm56_vm0, %v335_v19  ;;  %524 = vmatpush.msra.mxu0 %v518_v8  ;;  %v507_v19 = vld [vmem:[#allocation2 + $0x400] sm:$0xff] }
 0x15d   :  { %476 = vmatpush.msra.mxu3 %v432_v33  ;;  %406 = vmatpush.msra.mxu1 %v385_v54 }
 0x15e   :  { %525 = vmatpush.msra.mxu0 %v517_v9 }
 0x15f   :  { %477 = vmatpush.msra.mxu3 %v431_v34  ;;  %407 = vmatpush.msra.mxu1 %v384_v56 }
 0x160   :  { %526 = vmatpush.msra.mxu0 %v516_v10 }
 0x161   :  { %478 = vmatpush.msra.mxu3 %v430_v35 }
 0x162   :  { %527 = vmatpush.msra.mxu0 %v515_v11 }
 0x163   :  { %479 = vmatpush.msra.mxu3 %v429_v36 }
 0x164   :  { %528 = vmatpush.msra.mxu0 %v514_v12 }
 0x165   :  { %480 = vmatpush.msra.mxu3 %v428_v37 }
 0x166   :  { %529 = vmatpush.msra.mxu0 %v513_v13 }
 0x168   :  { %530 = vmatpush.msra.mxu0 %v512_v14 }
 0x16a   :  { %531 = vmatpush.msra.mxu0 %v511_v15 }
 0x16c   :  { %532 = vmatpush.msra.mxu0 %v510_v16 }
 0x16e   :  { %533 = vmatpush.msra.mxu0 %v509_v17 }
 0x170   :  { %534 = vmatpush.msra.mxu0 %v508_v18 }
 0x172   :  { %535 = vmatpush.msra.mxu0 %v507_v19 }
 0x174   :  { %536 = vmatpush.msra.mxu0 %v506_v22 }
 0x176   :  { %537 = vmatpush.msra.mxu0 %v505_v24 }
 0x193   :  { %v120_v31 = vpop.f32.mrf.mxu0  ;;  %v140_v41 = vpop.f32.mrf.mxu1 }
 0x194   :  { %v121_v32 = vadd.f32 %v120_v31, %v96_v30  ;;  %v141_v43 = vadd.f32 %v140_v41, %v97_v39  ;;  %v388_v41 = vld [vmem:[#allocation5 + $0x6] ss:$0 sm:$0xff] }
 0x196   :  { %461 = vmatmul.f32.vlgmr.msra.gmra.mxu2 %v121_v32 }
 0x1cf   :  { %v296_v42 = vpop.f32.mrf.mxu0 }
 0x1d0   :  { %v297_v44 = vadd.f32 %v296_v42, %v253_v40 }
 0x1d2   :  { %v1105_v45 = vadd.f32 %v297_v44, %v141_v43 }
 0x1d5   :  { %v276_v47 = vpop.f32.mrf.mxu3 }
 0x1d6   :  { %v277_v48 = vadd.f32 %v276_v47, %v252_v46  ;;  %v521_v46 = vld [vmem:[#allocation5 + $0x10] ss:$0 sm:$0xff] }
 0x1d8   :  { %481 = vmatmul.f32.vlgmr.msra.gmra.mxu3 %v277_v48 }
 0x1d9   :  { %v361_v52 = vpop.f32.mrf.mxu1 }
 0x1da   :  { %v362_v53 = vadd.f32 %v361_v52, %v340_v49 }
 0x1dc   :  { %v882_v55 = vmul.f32 -1.442695, %v362_v53 }
 0x1de   :  { %928 = vpow2.f32 %v882_v55 }
 0x1e4   :  { %v929_v57 = vpop.eup %928 }
 0x1e5   :  { %v367_v58 = vadd.f32 1.0, %v929_v57 }
 0x1e7   :  { %930 = vrcp.f32 %v367_v58  ;;  %v379_v61 = vand.u32 2147483648, %v367_v58  ;;  %vm373_vm3 = vweird.f32 %v367_v58  ;;  %v377_v63 = vand.u32 2147483647, %v367_v58 }
 0x1e9   :  { %v380_v1 = vor.u32 1.1754944e-38, %v379_v61  ;;  %vm378_vm7 = vcmp.eq.f32.partialorder %v377_v63, 8.507059e+37 }
 0x1ed   :  { %v931_v59 = vpop.eup %930 }
 0x1ee   :  { %v369_v60 = vmul.f32 %v931_v59, %v367_v58  ;;  %vm374_vm4 = vweird.f32 %v931_v59 }
 0x1ef   :  { %vm375_vm5 = vmor %vm373_vm3, %vm374_vm4 }
 0x1f0   :  { %v370_v62 = vsub.f32 1.0, %v369_v60 }
 0x1f2   :  { %v371_v0 = vmul.f32 %v931_v59, %v370_v62 }
 0x1f4   :  { %v372_v2 = vadd.f32 %v931_v59, %v371_v0 }
 0x1f6   :  { %v376_v3 = vsel %vm375_vm5, %v931_v59, %v372_v2 }
 0x1f7   :  { %v381_v5 = vsel %vm378_vm7, %v380_v1, %v376_v3 }
 0x1f8   :  { %v383_v4 = vmul.f32 %v381_v5, %v362_v53 }
 0x1fa   :  { %883 = vmatmul.msk.f32.vlgmr.msra.gmra.mxu1 %vm56_vm0, %v383_v4 }
 0x219   :  { %v462_v21 = vpop.f32.mrf.mxu2 }
 0x21a   :  { %v463_v23 = vadd.f32 %v462_v21, %v444_v20 }
 0x25b   :  { %v482_v25 = vpop.f32.mrf.mxu3 }
 0x25c   :  { %v483_v26 = vadd.f32 %v482_v25, %v463_v23 }
 0x25e   :  { %v884_v27 = vmul.f32 -1.442695, %v483_v26 }
 0x260   :  { %932 = vpow2.f32 %v884_v27 }
 0x266   :  { %v933_v28 = vpop.eup %932 }
 0x267   :  { %v488_v29 = vadd.f32 1.0, %v933_v28 }
 0x269   :  { %934 = vrcp.f32 %v488_v29  ;;  %v500_v33 = vand.u32 2147483648, %v488_v29  ;;  %v498_v35 = vand.u32 2147483647, %v488_v29  ;;  %vm494_vm9 = vweird.f32 %v488_v29 }
 0x26b   :  { %v501_v37 = vor.u32 1.1754944e-38, %v500_v33  ;;  %vm499_vm11 = vcmp.eq.f32.partialorder %v498_v35, 8.507059e+37  ;;  %v831_v35 = vld [vmem:[#allocation2 + $0x5c0] sm:$0xff] }
 0x26f   :  { %v935_v30 = vpop.eup %934 }
 0x270   :  { %v490_v31 = vmul.f32 %v935_v30, %v488_v29  ;;  %vm495_vm8 = vweird.f32 %v935_v30 }
 0x271   :  { %vm496_vm10 = vmor %vm494_vm9, %vm495_vm8 }
 0x272   :  { %v491_v32 = vsub.f32 1.0, %v490_v31 }
 0x274   :  { %v492_v34 = vmul.f32 %v935_v30, %v491_v32 }
 0x276   :  { %v493_v36 = vadd.f32 %v935_v30, %v492_v34  ;;  %v832_v34 = vld [vmem:[#allocation2 + $0x5d0] sm:$0xff] }
 0x277   :  { %v409_v42 = vpop.f32.mrf.mxu1 }
 0x278   :  { %v497_v38 = vsel %vm496_vm10, %v935_v30, %v493_v36  ;;  %v410_v43 = vadd.f32 %v409_v42, %v388_v41  ;;  %v830_v36 = vld [vmem:[#allocation2 + $0x5b0] sm:$0xff]  ;;  %v825_v41 = vld [vmem:[#allocation2 + $0x560] sm:$0xff] }
 0x279   :  { %v502_v39 = vsel %vm499_vm11, %v501_v37, %v497_v38  ;;  %v829_v37 = vld [vmem:[#allocation2 + $0x5a0] sm:$0xff]  ;;  %v828_v38 = vld [vmem:[#allocation2 + $0x590] sm:$0xff] }
 0x27a   :  { %v504_v40 = vmul.f32 %v502_v39, %v483_v26  ;;  %v543_v44 = vmul.f32 0.17677669, %v410_v43  ;;  %v827_v39 = vld [vmem:[#allocation2 + $0x580] sm:$0xff]  ;;  %v824_v42 = vld [vmem:[#allocation2 + $0x550] sm:$0xff] }
 0x27b   :  { %v823_v43 = vld [vmem:[#allocation2 + $0x540] sm:$0xff] }
 0x27c   :  { %538 = vmatmul.f32.vlgmr.msra.gmra.mxu0 %v504_v40  ;;  %671 = vrot.lane.b32.xlu0 %v543_v44, %s1037_s2  ;;  %v826_v40 = vld [vmem:[#allocation2 + $0x570] sm:$0xff] }
 0x2ee   :  { %v672_v50 = vpop.permute.xlu0 %671 }
 0x2f9   :  { %v539_v47 = vpop.f32.mrf.mxu0 }
 0x2fa   :  { %v540_v48 = vadd.f32 %v539_v47, %v521_v46  ;;  %v821_v46 = vld [vmem:[#allocation2 + $0x520] sm:$0xff]  ;;  %v820_v47 = vld [vmem:[#allocation2 + $0x510] sm:$0xff] }
 0x2fc   :  { %738 = vrot.lane.b32.xlu0 %v540_v48, %s1038_s7  ;;  %673 = vrot.lane.b32.xlu2 %v540_v48, %s1037_s2 }
 0x2fd   :  { %885 = vmatpush.xpose.msk.msrb.mxu1 %vm56_vm0, %v540_v48 }
 0x300   :  { %886 = vmatmul.msk.f32.vlgmr.msrb.gmra.mxu1 %vm56_vm0, %v543_v44 }
 0x301   :  { %598 = vmatpush.msra.mxu1 %v1105_v45 }
 0x304   :  { %605 = vrot.lane.b32.xlu2 %v543_v44, %s1039_s8 }
 0x30c   :  { %736 = vrot.lane.b32.xlu2 %v543_v44, %s1038_s7  ;;  %v822_v44 = vld [vmem:[#allocation2 + $0x530] sm:$0xff] }
 0x356   :  { %v674_v49 = vpop.permute.xlu2 %673 }
 0x357   :  { %891 = vmatpush.xpose.msk.msrb.mxu2 %vm56_vm0, %v674_v49  ;;  %v818_v49 = vld [vmem:[#allocation2 + $0x4f0] sm:$0xff] }
 0x35a   :  { %892 = vmatmul.msk.f32.vlgmr.msrb.gmra.mxu2 %vm56_vm0, %v672_v50  ;;  %v817_v50 = vld [vmem:[#allocation2 + $0x4e0] sm:$0xff] }
 0x35b   :  { %834 = vmatpush.msra.mxu2 %v832_v34 }
 0x35d   :  { %835 = vmatpush.msra.mxu2 %v831_v35 }
 0x35e   :  { %v606_v51 = vpop.permute.xlu2 %605 }
 0x35f   :  { %836 = vmatpush.msra.mxu2 %v830_v36 }
 0x361   :  { %837 = vmatpush.msra.mxu2 %v829_v37 }
 0x363   :  { %838 = vmatpush.msra.mxu2 %v828_v38 }
 0x365   :  { %839 = vmatpush.msra.mxu2 %v827_v39 }
 0x366   :  { %v737_v53 = vpop.permute.xlu2 %736 }
 0x367   :  { %840 = vmatpush.msra.mxu2 %v826_v40 }
 0x369   :  { %841 = vmatpush.msra.mxu2 %v825_v41 }
 0x36b   :  { %842 = vmatpush.msra.mxu2 %v824_v42 }
 0x36d   :  { %843 = vmatpush.msra.mxu2 %v823_v43 }
 0x36e   :  { %v739_v52 = vpop.permute.xlu0 %738 }
 0x36f   :  { %894 = vmatpush.xpose.msk.msrb.mxu0 %vm56_vm0, %v739_v52  ;;  %844 = vmatpush.msra.mxu2 %v822_v44 }
 0x371   :  { %845 = vmatpush.msra.mxu2 %v821_v46 }
 0x372   :  { %895 = vmatmul.msk.f32.vlgmr.msrb.gmra.mxu0 %vm56_vm0, %v737_v53 }
 0x373   :  { %846 = vmatpush.msra.mxu2 %v820_v47 }
 0x37d   :  { %v567_v54 = vpop.f32.mrf.mxu1 }
 0x37e   :  { %v571_v55 = vsel %vm570_vm12, %v567_v54, -inf }
 0x37f   :  { %572 = vmax.xlane.f32.xlu1 %v571_v55 }
 0x398   :  { %607 = vrot.lane.b32.xlu1 %v540_v48, %s1039_s8  ;;  %v819_v48 = vld [vmem:[#allocation2 + $0x500] sm:$0xff] }
 0x399   :  { %847 = vmatpush.msra.mxu2 %v819_v48 }
 0x39b   :  { %848 = vmatpush.msra.mxu2 %v818_v49 }
 0x39d   :  { %849 = vmatpush.msra.mxu2 %v817_v50 }
 0x3dd   :  { %v696_v56 = vpop.f32.mrf.mxu2 }
 0x3de   :  { %v699_v57 = vsel %vm570_vm12, %v696_v56, -inf }
 0x3df   :  { %700 = vmax.xlane.f32.xlu2 %v699_v57 }
 0x3ef   :  { %v761_v58 = vpop.f32.mrf.mxu0 }
 0x3f0   :  { %v764_v59 = vsel %vm570_vm12, %v761_v58, -inf }
 0x3f1   :  { %765 = vmax.xlane.f32.xlu1 %v764_v59 }
 0x3f2   :  { %v573_v60 = vpop.xlane.xlu1 %572 }
 0x3f3   :  { %v574_v61 = vsub.f32 %v567_v54, %v573_v60  ;;  %v833_v60 = vld [vmem:[#allocation5 + $0x11] ss:$0 sm:$0xff] }
 0x3f5   :  { %v575_v62 = vmul.f32 1.442695, %v574_v61 }
 0x3f7   :  { %936 = vpow2.f32 %v575_v62  ;;  %643 = vrot.lane.b32.xlu2 %v1105_v45, %s1039_s8 }
 0x3fd   :  { %v937_v63 = vpop.eup %936 }
 0x3fe   :  { %887 = vmatmul.msk.f32.vlgmr.msra.gmra.mxu1 %vm570_vm12, %v937_v63  ;;  %v577_v22 = vsel %vm570_vm12, %v937_v63, 0.0 }
 0x40a   :  { %v608_v0 = vpop.permute.xlu1 %607  ;;  %773 = vrot.lane.b32.xlu1 %v1105_v45, %s1038_s7 }
 0x40b   :  { %888 = vmatpush.xpose.msk.msrb.mxu1 %vm56_vm0, %v608_v0 }
 0x40e   :  { %889 = vmatmul.msk.f32.vlgmr.msrb.gmra.mxu1 %vm56_vm0, %v606_v51 }
 0x452   :  { %v701_v1 = vpop.xlane.xlu2 %700 }
 0x453   :  { %v702_v2 = vsub.f32 %v696_v56, %v701_v1 }
 0x455   :  { %v703_v3 = vmul.f32 1.442695, %v702_v2 }
 0x457   :  { %938 = vpow2.f32 %v703_v3 }
 0x45a   :  { %v644_v5 = vpop.permute.xlu2 %643 }
 0x45b   :  { %664 = vmatpush.msra.mxu1 %v644_v5 }
 0x45d   :  { %v939_v4 = vpop.eup %938 }
 0x45e   :  { %v705_v6 = vsel %vm570_vm12, %v939_v4, 0.0 }
 0x45f   :  { %706 = vadd.xlane.f32.xlu2 %v705_v6 }
 0x464   :  { %v766_v7 = vpop.xlane.xlu1 %765 }
 0x465   :  { %v767_v8 = vsub.f32 %v761_v58, %v766_v7 }
 0x467   :  { %v768_v9 = vmul.f32 1.442695, %v767_v8 }
 0x469   :  { %940 = vpow2.f32 %v768_v9 }
 0x46f   :  { %v941_v10 = vpop.eup %940 }
 0x470   :  { %v770_v11 = vsel %vm570_vm12, %v941_v10, 0.0 }
 0x471   :  { %771 = vadd.xlane.f32.xlu1 %v770_v11 }
 0x47b   :  { %v1133_v13 = vpop.f32.mrf.mxu1 }
 0x47c   :  { %v774_v12 = vpop.permute.xlu1 %773 }
 0x47d   :  { %794 = vmatpush.msrb.mxu1 %v774_v12 }
 0x48b   :  { %v630_v14 = vpop.f32.mrf.mxu1 }
 0x48c   :  { %v633_v15 = vsel %vm570_vm12, %v630_v14, -inf }
 0x48d   :  { %634 = vmax.xlane.f32.xlu0 %v633_v15 }
 0x4a1   :  { %708 = vrot.lane.b32.xlu0 %v1105_v45, %s1037_s2 }
 0x4d2   :  { %v707_v27 = vpop.xlane.xlu2 %706 }
 0x4e4   :  { %v772_v23 = vpop.xlane.xlu1 %771 }
 0x500   :  { %v635_v16 = vpop.xlane.xlu0 %634 }
 0x501   :  { %v636_v17 = vsub.f32 %v630_v14, %v635_v16 }
 0x503   :  { %v637_v18 = vmul.f32 1.442695, %v636_v17 }
 0x505   :  { %942 = vpow2.f32 %v637_v18 }
 0x50b   :  { %v943_v19 = vpop.eup %942 }
 0x50c   :  { %890 = vmatmul.msk.f32.vlgmr.msra.gmra.mxu1 %vm570_vm12, %v943_v19  ;;  %v639_v20 = vsel %vm570_vm12, %v943_v19, 0.0 }
 0x50d   :  { %640 = vadd.xlane.f32.xlu0 %v639_v20 }
 0x513   :  { %v709_v21 = vpop.permute.xlu0 %708 }
 0x514   :  { %729 = vmatpush.msrb.mxu3 %v709_v21  ;;  %896 = vmatmul.msk.f32.vlgmr.msrb.gmra.mxu1 %vm570_vm12, %v941_v10 }
 0x515   :  { %578 = vadd.xlane.f32.xlu0 %v577_v22  ;;  %893 = vmatmul.msk.f32.vlgmr.msrb.gmra.mxu3 %vm570_vm12, %v939_v4 }
 0x580   :  { %v641_v45 = vpop.xlane.xlu0 %640 }
 0x581   :  { %944 = vrcp.f32 %v641_v45 }
 0x582   :  { %946 = vrcp.f32 %v772_v23 }
 0x583   :  { %948 = vrcp.f32 %v707_v27 }
 0x587   :  { %v945_v24 = vpop.eup %944 }
 0x588   :  { %v947_v28 = vpop.eup %946  ;;  %v579_v51 = vpop.xlane.xlu0 %578 }
 0x589   :  { %v666_v25 = vpop.f32.mrf.mxu1  ;;  %v949_v31 = vpop.eup %948  ;;  %950 = vrcp.f32 %v579_v51 }
 0x58a   :  { %v670_v26 = vmul.f32 %v945_v24, %v666_v25 }
 0x58c   :  { %802 = vrot.lane.b32.xlu2 %v670_v26, %s1038_s7 }
 0x58f   :  { %v951_v52 = vpop.eup %950 }
 0x590   :  { %v604_v54 = vmul.f32 %v951_v52, %v1133_v13 }
 0x591   :  { %v796_v29 = vpop.f32.mrf.mxu1 }
 0x592   :  { %v800_v30 = vmul.f32 %v947_v28, %v796_v29 }
 0x594   :  { %810 = vrot.lane.b32.xlu1 %v800_v30, %s1039_s8 }
 0x598   :  { %v731_v32 = vpop.f32.mrf.mxu3 }
 0x599   :  { %v735_v33 = vmul.f32 %v949_v31, %v731_v32 }
 0x59b   :  { %806 = vrot.lane.b32.xlu0 %v735_v33, %s1037_s2 }
 0x5e6   :  { %v803_v53 = vpop.permute.xlu2 %802 }
 0x5e7   :  { %v813_v55 = vsel %vm56_vm0, %v604_v54, %v803_v53 }
 0x606   :  { %v811_v57 = vpop.permute.xlu1 %810 }
 0x60d   :  { %v807_v56 = vpop.permute.xlu0 %806 }
 0x60e   :  { %v814_v58 = vsel %vm189_vm6, %v813_v55, %v807_v56 }
 0x60f   :  { %v816_v59 = vsel %vm815_vm13, %v814_v58, %v811_v57 }
 0x610   :  { %850 = vmatmul.f32.vlgmr.msra.gmra.mxu2 %v816_v59 }
 0x693   :  { %v851_v61 = vpop.f32.mrf.mxu2 }
 0x694   :  { %v852_v62 = vadd.f32 %v851_v61, %v833_v60 }
 0x696   :  { %854 = vst.msk [vmem:[#allocation7] sm:$0xff] %vm56_vm0, %v852_v62 }
 0x697   :  { %865 = dma.vmem_to_hbm [thread:$0]  %s861_s10, 128, %s863_s13, [#allocation4]  }
 0x698   :  { %1028 = dma.done.wait [#allocation4], 128  }
 0x699   :  { %1029 = vsyncadd [#allocation4], 4294967168 }
 0x69a   :  { %870 = vsyncpa [#allocation3], 1 }
 0x69b   :  { %871 = vsyncpa [#allocation6], 1 }
 0x69c   :  { %872 = vsyncpa [#allocation4], 1 }

</bundles_post_ra>
